<compile_context>
chip_gen: v5e
topology: v5e:2x2
jax: 0.10.0
libtpu: 0.0.40
codegen_flags: <defaults>
</compile_context>

<pallas_src>
import functools

import jax
import jax.numpy as jnp
from jax.experimental import pallas as pl
from jax.experimental.pallas import tpu as pltpu


_VMEM_LIMIT = 32 * 1024 * 1024    # explicit scoped-VMEM limit; safe on v5e/v6e (128 MiB)
                                  # and v7x (64 MiB physical)
_VMEM_BUDGET = 28 * 1024 * 1024   # what we allow our own buffers to use (headroom left)


def _round_up(v, m):
    return (v + m - 1) // m * m


def _cdiv(a, b):
    return -(-a // b)


def _fused_gemm_bn_lrelu_kernel(a_ref, b_ref, scale_ref, bias_ref, o_ref, acc_ref,
                                *, tk, negative_slope, b_resident, precision):
    """One (tm, tn) output tile, reduced over the K grid axis.

    a_ref:     (tm, tk)            im2col patches (native dtype)
    b_ref:     (tk, tn) or (Kp,Np) conv weight (streamed block, or whole weight resident)
    scale_ref: (1, tn)             folded BN scale (f32)
    bias_ref:  (1, tn)             folded BN bias  (f32)
    o_ref:     (tm, tn)            output tile
    acc_ref:   (tm, tn)            f32 VMEM accumulator (persists across the K axis)
    """
    k = pl.program_id(2)

    @pl.when(k == 0)
    def _init():
        acc_ref[...] = jnp.zeros_like(acc_ref)

    if b_resident:
        # Whole padded weight lives in VMEM for the entire grid (constant index_map =>
        # Pallas never re-DMAs it).  Slice the current K panel; offset is 128-aligned.
        b_blk = b_ref[pl.ds(pl.multiple_of(k * tk, 128), tk), :]
    else:
        b_blk = b_ref[...]

    acc_ref[...] += jnp.dot(a_ref[...], b_blk,
                            preferred_element_type=jnp.float32,
                            precision=precision)

    @pl.when(k == pl.num_programs(2) - 1)
    def _finalize():
        y = acc_ref[...] * scale_ref[...] + bias_ref[...]      # fused BatchNorm (eval)
        y = jnp.where(y >= 0, y, negative_slope * y)           # LeakyReLU(0.2)
        o_ref[...] = y.astype(o_ref.dtype)


def _plan(M, K, N, in_dtype, out_dtype):
    """Pick tile sizes / padded sizes / weight-residency mode."""
    in_bytes = jnp.dtype(in_dtype).itemsize
    out_bytes = jnp.dtype(out_dtype).itemsize
    sub = 16 if in_bytes == 2 else 8          # bf16 packs 16 sublanes per vreg

    # ---- M (rows = B*Ho*Wo): sublane axis of A / out -------------------------------
    if M <= 256:
        tm = _round_up(M, sub)
        Mp = tm
    else:
        # Split evenly into <=512-row tiles, and into at least 2 tiles so the leading
        # "parallel" M axis can be sharded across v7x's two TensorCores.
        num_m = max(2, _cdiv(M, 512))
        tm = _round_up(_cdiv(M, num_m), sub)
        Mp = tm * num_m

    # ---- K (reduction = 16*C_in): lane axis of A, sublane axis of B ----------------
    Kp = _round_up(K, 128)
    num_k = _cdiv(Kp, 1024)
    tk = _round_up(_cdiv(Kp, num_k), 128)
    Kp = tk * num_k

    # ---- N (C_out): lane axis of B / out; always >=128 to avoid masked stores ------
    Np = _round_up(N, 128)

    # Prefer keeping the whole weight resident in VMEM (fetched exactly once).
    a_vmem = 2 * tm * tk * in_bytes
    misc = 1 << 20
    resident_cost = (2 * Kp * Np * in_bytes           # weight (double-buffer worst case)
                     + a_vmem
                     + tm * Np * 4                    # f32 accumulator
                     + 2 * tm * Np * out_bytes        # output double-buffer
                     + misc)
    b_resident = (Np <= 512) and (resident_cost <= _VMEM_BUDGET)
    if b_resident:
        tn = Np                                       # one N tile -> A streamed once
    else:
        tn = 256 if Np % 256 == 0 else 128            # 256-wide matches v6e/v7x MXU
    return (tm, tk, tn), (Mp, Kp, Np), b_resident


def downsample(x, weight, gamma, beta, running_mean, running_var, *,
               stride, padding, eps=1e-5, negative_slope=0.2, precision=None):
    """Forward pass of DownSample: Conv2d(k=4, no bias) -> BatchNorm2d -> LeakyReLU(0.2).

    x:      (B, C_in, H, W)        NCHW, f32 or bf16
    weight: (C_out, C_in, 4, 4)    OIHW
    gamma, beta, running_mean, running_var: (C_out,)
    `precision`: pass jax.lax.Precision.HIGHEST for f32 bit-parity with a CPU conv
    (default MXU precision is bf16-based passes).
    Returns (B, C_out, H_out, W_out) in x.dtype.
    """
    B, C_in, H, W = x.shape
    C_out = weight.shape[0]
    KH = KW = 4
    H_out = (H + 2 * padding - KH) // stride + 1
    W_out = (W + 2 * padding - KW) // stride + 1

    # ---- layout plumbing (zero FLOPs): pad, NCHW->NHWC, im2col ----------------------
    # TODO(synk): fold the patch extraction into the kernel (per-tap grid axis / manual
    # DMA gather from an NHWC input left in pl.ANY) to kill the ~(16/stride^2)x-input
    # im2col HBM round trip, and keep NHWC end-to-end if the surrounding model allows it
    # (each NCHW<->NHWC transpose is a full-tensor HBM round trip).
    x_p = jnp.pad(x, ((0, 0), (0, 0), (padding, padding), (padding, padding)))
    x_nhwc = jnp.transpose(x_p, (0, 2, 3, 1))                  # (B, Hp, Wp, C_in)
    cols = []
    for kh in range(KH):
        for kw in range(KW):
            cols.append(x_nhwc[:, kh: kh + stride * (H_out - 1) + 1: stride,
                                  kw: kw + stride * (W_out - 1) + 1: stride, :])
    patches = jnp.stack(cols, axis=3)                          # (B, Ho, Wo, 16, C_in)
    patches = patches.reshape(B * H_out * W_out, KH * KW * C_in)

    # weight (O, I, kh, kw) -> (kh, kw, I, O) -> (K, C_out), matching patch order
    w_mat = jnp.transpose(weight, (2, 3, 1, 0)).reshape(KH * KW * C_in, C_out)

    # ---- fold BatchNorm (eval mode) into per-channel scale/bias ----------------------
    inv_std = 1.0 / jnp.sqrt(running_var.astype(jnp.float32) + eps)
    scale = gamma.astype(jnp.float32) * inv_std                # (C_out,)
    bias = beta.astype(jnp.float32) - running_mean.astype(jnp.float32) * scale

    # ---- tiling / zero-padding so every tile divides evenly and is lane-aligned ------
    M, K = patches.shape
    N = C_out
    (tm, tk, tn), (Mp, Kp, Np), b_resident = _plan(M, K, N, x.dtype, x.dtype)

    patches_p = jnp.pad(patches, ((0, Mp - M), (0, Kp - K)))       # native dtype
    w_p = jnp.pad(w_mat, ((0, Kp - K), (0, Np - N)))               # native dtype
    scale_p = jnp.pad(scale.reshape(1, -1), ((0, 0), (0, Np - N)))
    bias_p = jnp.pad(bias.reshape(1, -1), ((0, 0), (0, Np - N)))

    grid = (Mp // tm, Np // tn, Kp // tk)

    if b_resident:
        # Constant block index -> whole weight DMA'd once and kept resident in VMEM.
        b_spec = pl.BlockSpec((Kp, Np), lambda i, j, k: (0, 0))
    else:
        b_spec = pl.BlockSpec((tk, tn), lambda i, j, k: (k, j))

    kernel = functools.partial(_fused_gemm_bn_lrelu_kernel, tk=tk,
                               negative_slope=negative_slope,
                               b_resident=b_resident, precision=precision)

    in_bytes = jnp.dtype(x.dtype).itemsize
    cost = pl.CostEstimate(
        flops=2 * Mp * Kp * Np,
        transcendentals=0,
        bytes_accessed=(Mp * Kp + Kp * Np + Mp * Np) * in_bytes + 2 * 4 * Np)

    out_flat = pl.pallas_call(
        kernel,
        out_shape=jax.ShapeDtypeStruct((Mp, Np), x.dtype),
        grid_spec=pltpu.PrefetchScalarGridSpec(
            num_scalar_prefetch=0,
            grid=grid,
            in_specs=[
                pl.BlockSpec((tm, tk), lambda i, j, k: (i, k)),   # im2col patches
                b_spec,                                           # conv weight
                pl.BlockSpec((1, tn), lambda i, j, k: (0, j)),    # BN scale
                pl.BlockSpec((1, tn), lambda i, j, k: (0, j)),    # BN bias
            ],
            out_specs=pl.BlockSpec((tm, tn), lambda i, j, k: (i, j)),
            scratch_shapes=[pltpu.VMEM((tm, tn), jnp.float32)],
        ),
        compiler_params=pltpu.CompilerParams(
            dimension_semantics=("parallel", "parallel", "arbitrary"),
            vmem_limit_bytes=_VMEM_LIMIT),
        cost_estimate=cost,
    )(patches_p, w_p, scale_p, bias_p)

    # Padded rows/cols (which saw bias+LeakyReLU on garbage) are sliced off here; do not
    # remove this slice or alias the padded output.
    out = out_flat[:M, :N].reshape(B, H_out, W_out, C_out)
    return jnp.transpose(out, (0, 3, 1, 2))                    # back to NCHW


if __name__ == "__main__":
    key = jax.random.PRNGKey(0)
    kx, kw_, kg, kb, km, kv = jax.random.split(key, 6)

    B, C_in, C_out, H, W = 2, 4, 8, 16, 16
    stride, padding = 2, 1

    x = jax.random.normal(kx, (B, C_in, H, W), dtype=jnp.float32)
    weight = jax.random.normal(kw_, (C_out, C_in, 4, 4), dtype=jnp.float32) * 0.1
    gamma = 1.0 + 0.1 * jax.random.normal(kg, (C_out,), dtype=jnp.float32)
    beta = 0.1 * jax.random.normal(kb, (C_out,), dtype=jnp.float32)
    running_mean = 0.1 * jax.random.normal(km, (C_out,), dtype=jnp.float32)
    running_var = jax.nn.softplus(jax.random.normal(kv, (C_out,), dtype=jnp.float32)) + 0.5

    out = jax.block_until_ready(
        downsample(x, weight, gamma, beta, running_mean, running_var,
                   stride=stride, padding=padding))

    # ---- plain-JAX reference ---------------------------------------------------------
    conv = jax.lax.conv_general_dilated(
        x, weight, window_strides=(stride, stride),
        padding=((padding, padding), (padding, padding)),
        dimension_numbers=("NCHW", "OIHW", "NCHW"))
    inv_std = 1.0 / jnp.sqrt(running_var + 1e-5)
    ref = (conv - running_mean[None, :, None, None]) * (gamma * inv_std)[None, :, None, None] \
          + beta[None, :, None, None]
    ref = jnp.where(ref >= 0, ref, 0.2 * ref)

    assert out.shape == ref.shape, (out.shape, ref.shape)
    assert jnp.allclose(out, ref, rtol=1e-4, atol=1e-4), float(jnp.max(jnp.abs(out - ref)))
    print("KERNEL_OK")
</pallas_src>

<mosaic_0001>
module attributes {stable_mosaic.version = 11 : i64} {
  func.func @_fused_gemm_bn_lrelu_kernel(%arg0: i32, %arg1: i32, %arg2: i32, %arg3: memref<128x128xf32, #tpu.memory_space<vmem>>, %arg4: memref<128x128xf32, #tpu.memory_space<vmem>>, %arg5: memref<1x128xf32, #tpu.memory_space<vmem>>, %arg6: memref<1x128xf32, #tpu.memory_space<vmem>>, %arg7: memref<128x128xf32, #tpu.memory_space<vmem>>, %arg8: memref<128x128xf32, #tpu.memory_space<vmem>>) attributes {dimension_semantics = [#tpu.dimension_semantics<parallel>, #tpu.dimension_semantics<parallel>, #tpu.dimension_semantics<arbitrary>], iteration_bounds = array<i64: 1, 1, 1>, scalar_prefetch = 0 : i64, scratch_operands = 1 : i64, tpu.core_type = #tpu.core_type<tc>, window_params = [{transform_indices = @transform_0, window_bounds = array<i64: 128, 128>}, {pipeline_mode = #tpu.pipeline_mode<synchronous>, transform_indices = @transform_1, window_bounds = array<i64: 128, 128>}, {transform_indices = @transform_2, window_bounds = array<i64: 1, 128>}, {transform_indices = @transform_3, window_bounds = array<i64: 1, 128>}, {transform_indices = @transform_4, window_bounds = array<i64: 128, 128>}]} {
    %c0_i32 = arith.constant 0 : i32
    %0 = arith.cmpi eq, %arg2, %c0_i32 : i32
    %1 = arith.extui %0 : i1 to i32
    %c0_i32_0 = arith.constant 0 : i32
    %2 = arith.cmpi ne, %1, %c0_i32_0 : i32
    scf.if %2 {
      %cst_9 = arith.constant 0.000000e+00 : f32
      %15 = vector.broadcast %cst_9 : f32 to vector<128x128xf32>
      %c0_10 = arith.constant 0 : index
      %c0_11 = arith.constant 0 : index
      %16 = vector.load %arg8[%c0_10, %c0_11] : memref<128x128xf32, #tpu.memory_space<vmem>>, vector<128x128xf32>
      tpu.vector_store %arg8[%c0_10, %c0_11], %15 {strides = array<i32>} : memref<128x128xf32, #tpu.memory_space<vmem>>, vector<128x128xf32>,
    } else {
    }
    %c128_i32 = arith.constant 128 : i32
    %3 = arith.muli %arg2, %c128_i32 : i32
    %4 = tpu.assume_multiple %3, 128 : i32
    %5 = arith.index_cast %4 : i32 to index
    %c0 = arith.constant 0 : index
    %6 = vector.load %arg4[%5, %c0] : memref<128x128xf32, #tpu.memory_space<vmem>>, vector<128x128xf32>
    %c0_1 = arith.constant 0 : index
    %c0_2 = arith.constant 0 : index
    %7 = vector.load %arg8[%c0_1, %c0_2] : memref<128x128xf32, #tpu.memory_space<vmem>>, vector<128x128xf32>
    %c0_3 = arith.constant 0 : index
    %c0_4 = arith.constant 0 : index
    %8 = vector.load %arg3[%c0_3, %c0_4] : memref<128x128xf32, #tpu.memory_space<vmem>>, vector<128x128xf32>
    %cst = arith.constant dense<0.000000e+00> : vector<128x128xf32>
    %9 = tpu.matmul %8, %6, %cst {dimension_numbers = #tpu.dot_dimension_numbers<[1], [0], [0], [1], [0, 0, 1, 1], [], []>} : vector<128x128xf32>, vector<128x128xf32>, vector<128x128xf32> -> vector<128x128xf32>
    %10 = arith.addf %7, %9 : vector<128x128xf32>
    %c0_5 = arith.constant 0 : index
    %c0_6 = arith.constant 0 : index
    %11 = vector.load %arg8[%c0_5, %c0_6] : memref<128x128xf32, #tpu.memory_space<vmem>>, vector<128x128xf32>
    tpu.vector_store %arg8[%c0_5, %c0_6], %10 {strides = array<i32>} : memref<128x128xf32, #tpu.memory_space<vmem>>, vector<128x128xf32>,
    %c0_i32_7 = arith.constant 0 : i32
    %12 = arith.cmpi eq, %arg2, %c0_i32_7 : i32
    %13 = arith.extui %12 : i1 to i32
    %c0_i32_8 = arith.constant 0 : i32
    %14 = arith.cmpi ne, %13, %c0_i32_8 : i32
    scf.if %14 {
      %c0_9 = arith.constant 0 : index
      %c0_10 = arith.constant 0 : index
      %15 = vector.load %arg8[%c0_9, %c0_10] : memref<128x128xf32, #tpu.memory_space<vmem>>, vector<128x128xf32>
      %c0_11 = arith.constant 0 : index
      %c0_12 = arith.constant 0 : index
      %16 = vector.load %arg5[%c0_11, %c0_12] : memref<1x128xf32, #tpu.memory_space<vmem>>, vector<1x128xf32>
      %17 = vector.broadcast %16 : vector<1x128xf32> to vector<128x128xf32>
      %18 = arith.mulf %15, %17 : vector<128x128xf32>
      %c0_13 = arith.constant 0 : index
      %c0_14 = arith.constant 0 : index
      %19 = vector.load %arg6[%c0_13, %c0_14] : memref<1x128xf32, #tpu.memory_space<vmem>>, vector<1x128xf32>
      %20 = vector.broadcast %19 : vector<1x128xf32> to vector<128x128xf32>
      %21 = arith.addf %18, %20 : vector<128x128xf32>
      %cst_15 = arith.constant 0.000000e+00 : f32
      %22 = vector.broadcast %cst_15 : f32 to vector<128x128xf32>
      %23 = arith.cmpf oge, %21, %22 : vector<128x128xf32>
      %cst_16 = arith.constant 2.000000e-01 : f32
      %24 = vector.broadcast %cst_16 : f32 to vector<128x128xf32>
      %25 = arith.mulf %24, %21 : vector<128x128xf32>
      %26 = arith.select %23, %21, %25 : vector<128x128xi1>, vector<128x128xf32>
      %c0_17 = arith.constant 0 : index
      %c0_18 = arith.constant 0 : index
      %27 = vector.load %arg7[%c0_17, %c0_18] : memref<128x128xf32, #tpu.memory_space<vmem>>, vector<128x128xf32>
      tpu.vector_store %arg7[%c0_17, %c0_18], %26 {strides = array<i32>} : memref<128x128xf32, #tpu.memory_space<vmem>>, vector<128x128xf32>,
    } else {
    }
    return
  }
  func.func @transform_0(%arg0: i32, %arg1: i32, %arg2: i32) -> (i32, i32) {
    %c0_i32 = arith.constant 0 : i32
    return %arg0, %arg2 : i32, i32
  }
  func.func @transform_1(%arg0: i32, %arg1: i32, %arg2: i32) -> (i32, i32) {
    %c0_i32 = arith.constant 0 : i32
    %c0_i32_0 = arith.constant 0 : i32
    %c0_i32_1 = arith.constant 0 : i32
    return %c0_i32, %c0_i32_0 : i32, i32
  }
  func.func @transform_2(%arg0: i32, %arg1: i32, %arg2: i32) -> (i32, i32) {
    %c0_i32 = arith.constant 0 : i32
    %c0_i32_0 = arith.constant 0 : i32
    return %c0_i32, %arg1 : i32, i32
  }
  func.func @transform_3(%arg0: i32, %arg1: i32, %arg2: i32) -> (i32, i32) {
    %c0_i32 = arith.constant 0 : i32
    %c0_i32_0 = arith.constant 0 : i32
    return %c0_i32, %arg1 : i32, i32
  }
  func.func @transform_4(%arg0: i32, %arg1: i32, %arg2: i32) -> (i32, i32) {
    %c0_i32 = arith.constant 0 : i32
    return %arg0, %arg1 : i32, i32
  }
}

</mosaic_0001>

<bundles_post_ra>
// kernel: tpu_custom_call.1
= control target key start
LH: loop header
LB: loop body
LE: loop exit
PB: predicated region body
PF: predicated region fallthrough
CT: control target
= control target key end

     0   :  { %9 = vsyncpa [#allocation4], 0  ;;  %s583_s0 = inlined_call_operand.hbm [shape: f32[128,128], index: 0, kind: input, shape index: {}]   ;;  %s584_s1 = inlined_call_operand.hbm [shape: f32[128,128], index: 1, kind: input, shape index: {}]   ;;  %s585_s2 = inlined_call_operand.vmem [shape: f32[1,128], index: 2, kind: input, shape index: {}]   ;;  %s586_s3 = inlined_call_operand.vmem [shape: f32[1,128], index: 3, kind: input, shape index: {}]   ;;  %s587_s4 = inlined_call_operand.hbm [shape: f32[128,128], index: 4, kind: output, shape index: {}]  }
   0x1   :  { %10 = vsyncpa [#allocation7], 0 }
   0x2   :  { %11 = vsyncpa [#allocation5], 0  ;;  %s16_s17 = sshll.u32 %s583_s0, 4  ;;  %s493_s18 = smov [#allocation3]   ;;  %s17_s17 = int_to_ptr.hbm [resolvable:$true] %s16_s17 }
   0x3   :  { %s18_s19 = sshll.u32 %s493_s18, 4  ;;  %s29_s22 = sshll.u32 %s584_s1, 4  ;;  %s19_s19 = int_to_ptr.vmem [resolvable:$true] %s18_s19  ;;  %s30_s22 = int_to_ptr.hbm [resolvable:$true] %s29_s22 }
   0x4   :  { %s494_s23 = smov 128   ;;  %s495_s24 = smov 8  }
   0x5   :  { %24 = dma.hbm_to_vmem [thread:$0]  %s17_s17, 2048, %s19_s19, [#allocation4], %s494_s23, %s494_s23, %s495_s24  }
   0x6   :  { %s496_s25 = smov [#allocation6]  }
   0x7   :  { %s31_s26 = sshll.u32 %s496_s25, 4  ;;  %s32_s26 = int_to_ptr.vmem [resolvable:$true] %s31_s26 }
   0x8   :  { %37 = dma.hbm_to_vmem [thread:$0]  %s30_s22, 2048, %s32_s26, [#allocation7], %s494_s23, %s494_s23, %s495_s24  }
   0x9   :  { %487 = dma.done.wait [#allocation4], 2048  }
   0xa   :  { %488 = vsyncadd [#allocation4], 4294965248 }
   0xb   :  { %489 = dma.done.wait [#allocation7], 2048  }
   0xc   :  { %490 = vsyncadd [#allocation7], 4294965248  ;;  %v87_v0 = vld [vmem:[#allocation6 + $0x78] sm:$0xff]  ;;  %v86_v1 = vld [vmem:[#allocation6 + $0x70] sm:$0xff]  ;;  %s346_s5 = sshll.u32 %s587_s4, 4  ;;  %s347_s5 = int_to_ptr.hbm [resolvable:$true] %s346_s5 }
   0xd   :  { %361 = vmatpush.msra.mxu2 %v87_v0  ;;  %362 = vmatpush.msra.mxu3 %v87_v0  ;;  %v85_v2 = vld [vmem:[#allocation6 + $0x68] sm:$0xff]  ;;  %v84_v3 = vld [vmem:[#allocation6 + $0x60] sm:$0xff]  ;;  %v83_v4 = vld [vmem:[#allocation6 + $0x58] sm:$0xff] }
   0xe   :  { %120 = vmatpush.msra.mxu0 %v87_v0  ;;  %360 = vmatpush.msra.mxu1 %v87_v0  ;;  %v82_v5 = vld [vmem:[#allocation6 + $0x50] sm:$0xff]  ;;  %v81_v6 = vld [vmem:[#allocation6 + $0x48] sm:$0xff]  ;;  %v80_v7 = vld [vmem:[#allocation6 + $0x40] sm:$0xff] }
   0xf   :  { %364 = vmatpush.msra.mxu2 %v86_v1  ;;  %365 = vmatpush.msra.mxu3 %v86_v1  ;;  %v79_v8 = vld [vmem:[#allocation6 + $0x38] sm:$0xff]  ;;  %v78_v9 = vld [vmem:[#allocation6 + $0x30] sm:$0xff]  ;;  %v77_v10 = vld [vmem:[#allocation6 + $0x28] sm:$0xff] }
  0x10   :  { %121 = vmatpush.msra.mxu0 %v86_v1  ;;  %363 = vmatpush.msra.mxu1 %v86_v1  ;;  %v76_v11 = vld [vmem:[#allocation6 + $0x20] sm:$0xff]  ;;  %v75_v12 = vld [vmem:[#allocation6 + $0x18] sm:$0xff]  ;;  %v74_v13 = vld [vmem:[#allocation6 + $0x10] sm:$0xff] }
  0x11   :  { %367 = vmatpush.msra.mxu2 %v85_v2  ;;  %368 = vmatpush.msra.mxu3 %v85_v2  ;;  %v73_v14 = vld [vmem:[#allocation6 + $0x8] sm:$0xff]  ;;  %v72_v15 = vld [vmem:[#allocation6] sm:$0xff]  ;;  %v114_v24 = vld [vmem:[#allocation3 + $0x50] sm:$0xff] }
  0x12   :  { %122 = vmatpush.msra.mxu0 %v85_v2  ;;  %366 = vmatpush.msra.mxu1 %v85_v2  ;;  %v112_v16 = vld [vmem:[#allocation3 + $0x40] sm:$0xff]  ;;  %v113_v20 = vld [vmem:[#allocation3 + $0x48] sm:$0xff]  ;;  %v118_v25 = vld [vmem:[#allocation3 + $0x70] sm:$0xff] }
  0x13   :  { %370 = vmatpush.msra.mxu2 %v84_v3  ;;  %371 = vmatpush.msra.mxu3 %v84_v3  ;;  %v116_v17 = vld [vmem:[#allocation3 + $0x60] sm:$0xff]  ;;  %v117_v21 = vld [vmem:[#allocation3 + $0x68] sm:$0xff]  ;;  %v106_v26 = vld [vmem:[#allocation3 + $0x10] sm:$0xff] }
  0x14   :  { %123 = vmatpush.msra.mxu0 %v84_v3  ;;  %369 = vmatpush.msra.mxu1 %v84_v3  ;;  %v104_v18 = vld [vmem:[#allocation3] sm:$0xff]  ;;  %v105_v22 = vld [vmem:[#allocation3 + $0x8] sm:$0xff]  ;;  %v110_v27 = vld [vmem:[#allocation3 + $0x30] sm:$0xff] }
  0x15   :  { %373 = vmatpush.msra.mxu2 %v83_v4  ;;  %374 = vmatpush.msra.mxu3 %v83_v4  ;;  %v108_v19 = vld [vmem:[#allocation3 + $0x20] sm:$0xff]  ;;  %v109_v23 = vld [vmem:[#allocation3 + $0x28] sm:$0xff]  ;;  %v115_v28 = vld [vmem:[#allocation3 + $0x58] sm:$0xff] }
  0x16   :  { %124 = vmatpush.msra.mxu0 %v83_v4  ;;  %372 = vmatpush.msra.mxu1 %v83_v4  ;;  %v119_v29 = vld [vmem:[#allocation3 + $0x78] sm:$0xff]  ;;  %v538_v32 = vld [vmem:[%s585_s2] ss:$0 sm:$0xff]  ;;  %s497_s2 = smov [#allocation8]  }
  0x17   :  { %376 = vmatpush.msra.mxu2 %v82_v5  ;;  %377 = vmatpush.msra.mxu3 %v82_v5  ;;  %v107_v30 = vld [vmem:[#allocation3 + $0x18] sm:$0xff]  ;;  %v543_v33 = vld [vmem:[%s586_s3] ss:$0 sm:$0xff]  ;;  %s344_s3 = sshll.u32 %s497_s2, 4  ;;  %s345_s3 = int_to_ptr.vmem [resolvable:$true] %s344_s3 }
  0x18   :  { %125 = vmatpush.msra.mxu0 %v82_v5  ;;  %375 = vmatpush.msra.mxu1 %v82_v5  ;;  %v111_v31 = vld [vmem:[#allocation3 + $0x38] sm:$0xff] }
  0x19   :  { %379 = vmatpush.msra.mxu2 %v81_v6  ;;  %380 = vmatpush.msra.mxu3 %v81_v6 }
  0x1a   :  { %126 = vmatpush.msra.mxu0 %v81_v6  ;;  %378 = vmatpush.msra.mxu1 %v81_v6 }
  0x1b   :  { %382 = vmatpush.msra.mxu2 %v80_v7  ;;  %383 = vmatpush.msra.mxu3 %v80_v7 }
  0x1c   :  { %127 = vmatpush.msra.mxu0 %v80_v7  ;;  %381 = vmatpush.msra.mxu1 %v80_v7 }
  0x1d   :  { %385 = vmatpush.msra.mxu2 %v79_v8  ;;  %386 = vmatpush.msra.mxu3 %v79_v8 }
  0x1e   :  { %128 = vmatpush.msra.mxu0 %v79_v8  ;;  %384 = vmatpush.msra.mxu1 %v79_v8 }
  0x1f   :  { %388 = vmatpush.msra.mxu2 %v78_v9  ;;  %389 = vmatpush.msra.mxu3 %v78_v9 }
  0x20   :  { %129 = vmatpush.msra.mxu0 %v78_v9  ;;  %387 = vmatpush.msra.mxu1 %v78_v9 }
  0x21   :  { %391 = vmatpush.msra.mxu2 %v77_v10  ;;  %392 = vmatpush.msra.mxu3 %v77_v10 }
  0x22   :  { %130 = vmatpush.msra.mxu0 %v77_v10  ;;  %390 = vmatpush.msra.mxu1 %v77_v10 }
  0x23   :  { %394 = vmatpush.msra.mxu2 %v76_v11  ;;  %395 = vmatpush.msra.mxu3 %v76_v11 }
  0x24   :  { %131 = vmatpush.msra.mxu0 %v76_v11  ;;  %393 = vmatpush.msra.mxu1 %v76_v11 }
  0x25   :  { %397 = vmatpush.msra.mxu2 %v75_v12  ;;  %398 = vmatpush.msra.mxu3 %v75_v12 }
  0x26   :  { %132 = vmatpush.msra.mxu0 %v75_v12  ;;  %396 = vmatpush.msra.mxu1 %v75_v12 }
  0x27   :  { %400 = vmatpush.msra.mxu2 %v74_v13  ;;  %401 = vmatpush.msra.mxu3 %v74_v13 }
  0x28   :  { %133 = vmatpush.msra.mxu0 %v74_v13  ;;  %399 = vmatpush.msra.mxu1 %v74_v13 }
  0x29   :  { %403 = vmatpush.msra.mxu2 %v73_v14  ;;  %404 = vmatpush.msra.mxu3 %v73_v14 }
  0x2a   :  { %134 = vmatpush.msra.mxu0 %v73_v14  ;;  %402 = vmatpush.msra.mxu1 %v73_v14 }
  0x2b   :  { %406 = vmatpush.msra.mxu2 %v72_v15  ;;  %407 = vmatpush.msra.mxu3 %v72_v15 }
  0x2c   :  { %160 = vmatmul.f32.vlgmr.msra.gmra.mxu2 %v112_v16  ;;  %172 = vmatmul.f32.vlgmr.msra.gmra.mxu3 %v116_v17 }
  0x2d   :  { %135 = vmatpush.msra.mxu0 %v72_v15  ;;  %405 = vmatpush.msra.mxu1 %v72_v15 }
  0x2e   :  { %136 = vmatmul.f32.vlgmr.msra.gmra.mxu0 %v104_v18  ;;  %148 = vmatmul.f32.vlgmr.msra.gmra.mxu1 %v108_v19 }
  0x34   :  { %163 = vmatmul.f32.gmra.mxu2 %v113_v20  ;;  %175 = vmatmul.f32.gmra.mxu3 %v117_v21 }
  0x36   :  { %139 = vmatmul.f32.gmra.mxu0 %v105_v22  ;;  %151 = vmatmul.f32.gmra.mxu1 %v109_v23 }
  0x3c   :  { %166 = vmatmul.f32.gmra.mxu2 %v114_v24  ;;  %178 = vmatmul.f32.gmra.mxu3 %v118_v25 }
  0x3e   :  { %142 = vmatmul.f32.gmra.mxu0 %v106_v26  ;;  %154 = vmatmul.f32.gmra.mxu1 %v110_v27 }
  0x44   :  { %169 = vmatmul.f32.gmra.mxu2 %v115_v28  ;;  %181 = vmatmul.f32.gmra.mxu3 %v119_v29 }
  0x46   :  { %145 = vmatmul.f32.gmra.mxu0 %v107_v30  ;;  %157 = vmatmul.f32.gmra.mxu1 %v111_v31 }
  0xab   :  { %v137_v34 = vpop.f32.mrf.mxu0  ;;  %v149_v35 = vpop.f32.mrf.mxu1 }
  0xac   :  { %v240_v36 = vmul.f32 %v538_v32, %v137_v34  ;;  %v244_v37 = vmul.f32 %v538_v32, %v149_v35 }
  0xae   :  { %v260_v38 = vadd.f32 %v543_v33, %v240_v36  ;;  %v264_v39 = vadd.f32 %v543_v33, %v244_v37 }
  0xaf   :  { %v161_v40 = vpop.f32.mrf.mxu2  ;;  %v173_v41 = vpop.f32.mrf.mxu3 }
  0xb0   :  { %vm276_vm0 = vcmp.ge.f32.partialorder %v260_v38, 0.0  ;;  %v292_v42 = vmul.f32 0.2, %v260_v38  ;;  %vm280_vm1 = vcmp.ge.f32.partialorder %v264_v39, 0.0  ;;  %v296_v43 = vmul.f32 0.2, %v264_v39 }
  0xb1   :  { %v248_v44 = vmul.f32 %v538_v32, %v161_v40  ;;  %v252_v45 = vmul.f32 %v538_v32, %v173_v41 }
  0xb2   :  { %v308_v46 = vsel %vm276_vm0, %v260_v38, %v292_v42  ;;  %v312_v47 = vsel %vm280_vm1, %v264_v39, %v296_v43 }
  0xb3   :  { %324 = vst [vmem:[#allocation8] sm:$0xff] %v308_v46  ;;  %v268_v48 = vadd.f32 %v543_v33, %v248_v44  ;;  %v272_v49 = vadd.f32 %v543_v33, %v252_v45  ;;  %v140_v50 = vpop.f32.mrf.mxu0  ;;  %v152_v51 = vpop.f32.mrf.mxu1 }
  0xb4   :  { %328 = vst [vmem:[#allocation8 + $0x20] sm:$0xff] %v312_v47  ;;  %v241_v52 = vmul.f32 %v538_v32, %v140_v50  ;;  %v245_v53 = vmul.f32 %v538_v32, %v152_v51 }
  0xb5   :  { %vm284_vm2 = vcmp.ge.f32.partialorder %v268_v48, 0.0  ;;  %v300_v54 = vmul.f32 0.2, %v268_v48  ;;  %vm288_vm3 = vcmp.ge.f32.partialorder %v272_v49, 0.0  ;;  %v304_v55 = vmul.f32 0.2, %v272_v49 }
  0xb6   :  { %v261_v56 = vadd.f32 %v543_v33, %v241_v52  ;;  %v265_v57 = vadd.f32 %v543_v33, %v245_v53 }
  0xb7   :  { %v316_v58 = vsel %vm284_vm2, %v268_v48, %v300_v54  ;;  %v320_v59 = vsel %vm288_vm3, %v272_v49, %v304_v55  ;;  %v164_v60 = vpop.f32.mrf.mxu2  ;;  %v176_v61 = vpop.f32.mrf.mxu3 }
  0xb8   :  { %332 = vst [vmem:[#allocation8 + $0x40] sm:$0xff] %v316_v58  ;;  %vm277_vm4 = vcmp.ge.f32.partialorder %v261_v56, 0.0  ;;  %v293_v62 = vmul.f32 0.2, %v261_v56  ;;  %vm281_vm5 = vcmp.ge.f32.partialorder %v265_v57, 0.0  ;;  %v249_v63 = vmul.f32 %v538_v32, %v164_v60 }
  0xb9   :  { %336 = vst [vmem:[#allocation8 + $0x60] sm:$0xff] %v320_v59  ;;  %v297_v0 = vmul.f32 0.2, %v265_v57  ;;  %v253_v1 = vmul.f32 %v538_v32, %v176_v61 }
  0xba   :  { %v309_v2 = vsel %vm277_vm4, %v261_v56, %v293_v62  ;;  %v269_v3 = vadd.f32 %v543_v33, %v249_v63 }
  0xbb   :  { %325 = vst [vmem:[#allocation8 + $0x8] sm:$0xff] %v309_v2  ;;  %v313_v4 = vsel %vm281_vm5, %v265_v57, %v297_v0  ;;  %v273_v5 = vadd.f32 %v543_v33, %v253_v1  ;;  %v143_v6 = vpop.f32.mrf.mxu0  ;;  %v155_v7 = vpop.f32.mrf.mxu1 }
  0xbc   :  { %329 = vst [vmem:[#allocation8 + $0x28] sm:$0xff] %v313_v4  ;;  %vm285_vm6 = vcmp.ge.f32.partialorder %v269_v3, 0.0  ;;  %v301_v8 = vmul.f32 0.2, %v269_v3  ;;  %v242_v9 = vmul.f32 %v538_v32, %v143_v6  ;;  %v246_v10 = vmul.f32 %v538_v32, %v155_v7 }
  0xbd   :  { %vm289_vm7 = vcmp.ge.f32.partialorder %v273_v5, 0.0  ;;  %v305_v11 = vmul.f32 0.2, %v273_v5 }
  0xbe   :  { %v317_v12 = vsel %vm285_vm6, %v269_v3, %v301_v8  ;;  %v262_v13 = vadd.f32 %v543_v33, %v242_v9  ;;  %v266_v14 = vadd.f32 %v543_v33, %v246_v10 }
  0xbf   :  { %333 = vst [vmem:[#allocation8 + $0x48] sm:$0xff] %v317_v12  ;;  %v321_v15 = vsel %vm289_vm7, %v273_v5, %v305_v11  ;;  %v167_v16 = vpop.f32.mrf.mxu2  ;;  %v179_v17 = vpop.f32.mrf.mxu3 }
  0xc0   :  { %337 = vst [vmem:[#allocation8 + $0x68] sm:$0xff] %v321_v15  ;;  %vm278_vm8 = vcmp.ge.f32.partialorder %v262_v13, 0.0  ;;  %v294_v18 = vmul.f32 0.2, %v262_v13  ;;  %vm282_vm9 = vcmp.ge.f32.partialorder %v266_v14, 0.0  ;;  %v250_v19 = vmul.f32 %v538_v32, %v167_v16 }
  0xc1   :  { %v298_v20 = vmul.f32 0.2, %v266_v14  ;;  %v254_v21 = vmul.f32 %v538_v32, %v179_v17 }
  0xc2   :  { %v310_v22 = vsel %vm278_vm8, %v262_v13, %v294_v18  ;;  %v270_v23 = vadd.f32 %v543_v33, %v250_v19 }
  0xc3   :  { %326 = vst [vmem:[#allocation8 + $0x10] sm:$0xff] %v310_v22  ;;  %v314_v24 = vsel %vm282_vm9, %v266_v14, %v298_v20  ;;  %v274_v25 = vadd.f32 %v543_v33, %v254_v21  ;;  %v146_v26 = vpop.f32.mrf.mxu0  ;;  %v158_v27 = vpop.f32.mrf.mxu1 }
  0xc4   :  { %330 = vst [vmem:[#allocation8 + $0x30] sm:$0xff] %v314_v24  ;;  %vm286_vm10 = vcmp.ge.f32.partialorder %v270_v23, 0.0  ;;  %v302_v28 = vmul.f32 0.2, %v270_v23  ;;  %v243_v29 = vmul.f32 %v538_v32, %v146_v26  ;;  %v247_v30 = vmul.f32 %v538_v32, %v158_v27 }
  0xc5   :  { %vm290_vm11 = vcmp.ge.f32.partialorder %v274_v25, 0.0  ;;  %v306_v31 = vmul.f32 0.2, %v274_v25 }
  0xc6   :  { %v318_v34 = vsel %vm286_vm10, %v270_v23, %v302_v28  ;;  %v263_v35 = vadd.f32 %v543_v33, %v243_v29  ;;  %v267_v36 = vadd.f32 %v543_v33, %v247_v30 }
  0xc7   :  { %334 = vst [vmem:[#allocation8 + $0x50] sm:$0xff] %v318_v34  ;;  %v322_v37 = vsel %vm290_vm11, %v274_v25, %v306_v31  ;;  %v170_v38 = vpop.f32.mrf.mxu2  ;;  %v182_v39 = vpop.f32.mrf.mxu3 }
  0xc8   :  { %338 = vst [vmem:[#allocation8 + $0x70] sm:$0xff] %v322_v37  ;;  %vm279_vm12 = vcmp.ge.f32.partialorder %v263_v35, 0.0  ;;  %v295_v40 = vmul.f32 0.2, %v263_v35  ;;  %vm283_vm13 = vcmp.ge.f32.partialorder %v267_v36, 0.0  ;;  %v251_v41 = vmul.f32 %v538_v32, %v170_v38 }
  0xc9   :  { %v299_v42 = vmul.f32 0.2, %v267_v36  ;;  %v255_v43 = vmul.f32 %v538_v32, %v182_v39 }
  0xca   :  { %v311_v44 = vsel %vm279_vm12, %v263_v35, %v295_v40  ;;  %v271_v45 = vadd.f32 %v543_v33, %v251_v41 }
  0xcb   :  { %327 = vst [vmem:[#allocation8 + $0x18] sm:$0xff] %v311_v44  ;;  %v315_v46 = vsel %vm283_vm13, %v267_v36, %v299_v42  ;;  %v275_v47 = vadd.f32 %v543_v33, %v255_v43 }
  0xcc   :  { %331 = vst [vmem:[#allocation8 + $0x38] sm:$0xff] %v315_v46  ;;  %vm287_vm14 = vcmp.ge.f32.partialorder %v271_v45, 0.0  ;;  %v303_v48 = vmul.f32 0.2, %v271_v45 }
  0xcd   :  { %vm291_vm15 = vcmp.ge.f32.partialorder %v275_v47, 0.0  ;;  %v307_v49 = vmul.f32 0.2, %v275_v47 }
  0xce   :  { %v319_v50 = vsel %vm287_vm14, %v271_v45, %v303_v48 }
  0xcf   :  { %335 = vst [vmem:[#allocation8 + $0x58] sm:$0xff] %v319_v50  ;;  %v323_v32 = vsel %vm291_vm15, %v275_v47, %v307_v49 }
  0xd0   :  { %339 = vst [vmem:[#allocation8 + $0x78] sm:$0xff] %v323_v32 }
  0xd1   :  { %352 = dma.vmem_to_hbm [thread:$0]  %s345_s3, 2048, %s347_s5, [#allocation5], %s494_s23, %s494_s23, %s495_s24  }
  0xd2   :  { %491 = dma.done.wait [#allocation5], 2048  }
  0xd3   :  { %492 = vsyncadd [#allocation5], 4294965248 }
  0xd4   :  { %357 = vsyncpa [#allocation4], 1 }
  0xd5   :  { %358 = vsyncpa [#allocation7], 1 }
  0xd6   :  { %359 = vsyncpa [#allocation5], 1 }

</bundles_post_ra>
